<compile_context>
chip_gen: v5e
topology: v5e:2x2
jax: 0.10.0
libtpu: 0.0.40
codegen_flags: <defaults>
</compile_context>

<pallas_src>
import functools

import jax
import jax.numpy as jnp
from jax import lax
from jax.experimental import pallas as pl
from jax.experimental.pallas import tpu as pltpu


_VMEM_LIMIT_BYTES = 32 << 20       # explicit scoped-VMEM budget (within v7x's 64 MiB physical)
_TARGET_BLOCK_BYTES = 4 << 20      # ~4 MiB tiles; 4x (double-buffered in+out) = 16 MiB < limit


# ----------------------------------------------------------------------------- helpers
def _row_tile(num_rows: int, row_bytes: int,
              target_bytes: int = _TARGET_BLOCK_BYTES) -> int:
    """Rows per block: whole array if it fits the target, else a multiple of 8 near the
    byte target.  The grid uses pl.cdiv, so num_rows need NOT be divisible by the tile
    (boundary blocks are masked) -- no whole-array fallback that could blow VMEM."""
    if num_rows * row_bytes <= target_bytes:
        return num_rows
    t = (target_bytes // max(row_bytes, 1)) // 8 * 8
    return max(8, min(int(t), num_rows))


def _lane_dense_2d(shape):
    """Pick a (rows, width) view of an elementwise array with width a large multiple of
    128, so stores are unmasked full-lane vst.  Returns None if no clean factorization."""
    total = 1
    for s in shape:
        total *= int(s)
    for w in (4096, 2048, 1024, 512, 256, 128):
        if total % w == 0:
            return total // w, w
    return None


def _i32(c: int) -> int:
    """Reinterpret a uint32 constant as a Python int in int32 range (two's complement)."""
    c &= 0xFFFFFFFF
    return c - (1 << 32) if c >= (1 << 31) else c


_HASH_M1 = _i32(0x7FEB352D)
_HASH_M2 = _i32(0x846CA68B)
_GOLDEN = _i32(0x9E3779B9)


def _srl(x, k: int):
    """Logical right shift for int32 vectors (arithmetic shift + mask of sign-extension)."""
    return (x >> k) & ((1 << (32 - k)) - 1)


def _hash32(x):
    """lowbias32-style avalanche hash; int32 arithmetic wraps like uint32 bit patterns."""
    x = x ^ _srl(x, 16)
    x = x * _HASH_M1
    x = x ^ _srl(x, 15)
    x = x * _HASH_M2
    x = x ^ _srl(x, 16)
    return x


# ----------------------------------------------------------------------------- LayerNorm
def _layernorm_kernel(x_ref, g_ref, b_ref, o_ref, *, eps: float, inv_d: float):
    x = x_ref[...].astype(jnp.float32)                     # (tR, D)
    s1 = jnp.sum(x, axis=-1, keepdims=True)                # two independent reductions
    s2 = jnp.sum(x * x, axis=-1, keepdims=True)            # (overlap on the XLU ports)
    mean = s1 * inv_d
    var = jnp.maximum(s2 * inv_d - mean * mean, 0.0)
    inv = lax.rsqrt(var + eps)                             # EUP, off the VALU slot
    o_ref[...] = ((x - mean) * inv * g_ref[...] + b_ref[...]).astype(o_ref.dtype)


def layernorm_pallas(x2, gamma, beta, eps: float = 1e-5):
    """x2: (R, D); gamma/beta: (D,). Matches nn.LayerNorm(D) (biased variance)."""
    R, D = x2.shape
    tR = _row_tile(R, D * x2.dtype.itemsize)
    grid = (pl.cdiv(R, tR),)
    g2 = gamma.reshape(1, D).astype(jnp.float32)
    b2 = beta.reshape(1, D).astype(jnp.float32)

    return pl.pallas_call(
        functools.partial(_layernorm_kernel, eps=float(eps), inv_d=1.0 / D),
        out_shape=jax.ShapeDtypeStruct((R, D), x2.dtype),
        grid=grid,
        in_specs=[
            pl.BlockSpec((tR, D), lambda i: (i, 0)),       # row tile of x
            pl.BlockSpec((1, D), lambda i: (0, 0)),        # gamma (resident)
            pl.BlockSpec((1, D), lambda i: (0, 0)),        # beta  (resident)
        ],
        out_specs=pl.BlockSpec((tR, D), lambda i: (i, 0)),
        compiler_params=pltpu.CompilerParams(
            dimension_semantics=("parallel",),
            vmem_limit_bytes=_VMEM_LIMIT_BYTES),
    )(x2, g2, b2)


# ----------------------------------------------------------------------------- Dropout
def _dropout_kernel(seed_ref, x_ref, o_ref, *, threshold: int, scale: float,
                    block_rows: int, width: int):
    # Keep-mask = pure function of (seed, global element index): deterministic and
    # independent of grid order / tile size, so "parallel" sharding is safe.
    i = pl.program_id(0)
    rows = lax.broadcasted_iota(jnp.int32, x_ref.shape, 0) + i * block_rows
    cols = lax.broadcasted_iota(jnp.int32, x_ref.shape, 1)
    idx = rows * width + cols
    bits = _hash32(idx ^ (seed_ref[0] * _GOLDEN)) & 0x00FFFFFF   # 24 uniform bits, >= 0
    keep = bits >= threshold                                     # integer-domain compare
    o_ref[...] = jnp.where(keep, x_ref[...] * scale, 0.0).astype(o_ref.dtype)


def dropout_pallas(x, rate: float, seed):
    """Inverted dropout on an arbitrary-shape activation (keep w.p. 1-rate, scale 1/(1-rate))."""
    orig_shape = x.shape
    rd = _lane_dense_2d(orig_shape)
    if rd is None:
        # TODO(synk): element count has no multiple-of-128 factorization; fall back to the
        # trailing-dim layout (boundary/masked stores), still correct.
        x2 = x.reshape(-1, orig_shape[-1])
    else:
        x2 = x.reshape(rd)
    R, W = x2.shape
    tR = _row_tile(R, W * x2.dtype.itemsize)
    grid = (pl.cdiv(R, tR),)
    threshold = int(round(float(rate) * (1 << 24)))
    scale = 1.0 / (1.0 - float(rate))
    seed_arr = jnp.asarray([seed], dtype=jnp.int32)

    out = pl.pallas_call(
        functools.partial(_dropout_kernel, threshold=threshold, scale=scale,
                          block_rows=tR, width=W),
        out_shape=jax.ShapeDtypeStruct((R, W), x2.dtype),
        grid_spec=pltpu.PrefetchScalarGridSpec(
            num_scalar_prefetch=1,                          # seed lives in SMEM
            grid=grid,
            in_specs=[pl.BlockSpec((tR, W), lambda i, seed: (i, 0))],
            out_specs=pl.BlockSpec((tR, W), lambda i, seed: (i, 0)),
        ),
        input_output_aliases={1: 0},                        # donate the activation buffer
        compiler_params=pltpu.CompilerParams(
            dimension_semantics=("parallel",),
            vmem_limit_bytes=_VMEM_LIMIT_BYTES),
    )(seed_arr, x2)
    return out.reshape(orig_shape)


# ----------------------------------------------------------------------------- PreNormDrop
def pre_norm_drop(x, gamma, beta, fn, dropout_rate: float = 0.0, *,
                  eps: float = 1e-5, rng_seed: int = 0, training: bool = True):
    """PreNormDrop.forward: dropout(fn(layer_norm(x))).  x: (..., D).

    NOTE: thread a distinct `rng_seed` per layer and per training step; reusing the same
    seed with the same shape reproduces the same dropout mask (correlated dropout)."""
    D = x.shape[-1]
    y = layernorm_pallas(x.reshape(-1, D), gamma, beta, eps).reshape(x.shape)

    # TODO(synk): `fn` is an arbitrary nn.Module in the PyTorch spec; applied here as a
    # user-supplied JAX callable.  If fn's last op is known (e.g. Linear), fuse the dropout
    # below into that op's epilogue to remove one full HBM read+write of the activation.
    y = fn(y)

    if training and dropout_rate > 0.0:
        if dropout_rate >= 1.0:
            return jnp.zeros_like(y)
        y = dropout_pallas(y, dropout_rate, rng_seed)
    return y


# ----------------------------------------------------------------------------- demo / check
if __name__ == "__main__":
    B, T, D = 2, 8, 32          # batch=2, seq=8, hidden=32

    key = jax.random.PRNGKey(0)
    kx, kg, kb, kw, kwb = jax.random.split(key, 5)
    x = jax.random.normal(kx, (B, T, D), dtype=jnp.float32)
    gamma = 1.0 + 0.1 * jax.random.normal(kg, (D,), dtype=jnp.float32)   # LayerNorm weight
    beta = 0.1 * jax.random.normal(kb, (D,), dtype=jnp.float32)          # LayerNorm bias
    W = jax.random.normal(kw, (D, D), dtype=jnp.float32) / jnp.sqrt(D)   # stand-in `fn`
    bw = 0.01 * jax.random.normal(kwb, (D,), dtype=jnp.float32)
    fn = lambda z: jnp.einsum("btd,de->bte", z, W) + bw

    # --- Path 1: dropout_rate = 0.0 (module default) -> exact check vs JAX reference.
    out0 = jax.block_until_ready(pre_norm_drop(x, gamma, beta, fn, dropout_rate=0.0))

    def ref_layernorm(xx, g, b, eps=1e-5):
        m = jnp.mean(xx, axis=-1, keepdims=True)
        v = jnp.mean((xx - m) ** 2, axis=-1, keepdims=True)
        return (xx - m) / jnp.sqrt(v + eps) * g + b

    ref0 = fn(ref_layernorm(x, gamma, beta))
    assert out0.shape == (B, T, D)
    assert jnp.allclose(out0, ref0, atol=1e-4, rtol=1e-4), "LayerNorm+fn mismatch"

    # --- Path 2: dropout_rate = 0.5 -> exercise the Pallas dropout kernel; property check:
    # every element is either exactly dropped (0) or the kept value scaled by 1/(1-p).
    p = 0.5
    out1 = jax.block_until_ready(
        pre_norm_drop(x, gamma, beta, fn, dropout_rate=p, rng_seed=123, training=True))
    scaled = ref0 / (1.0 - p)
    is_zero = jnp.abs(out1) <= 1e-6
    is_scaled = jnp.abs(out1 - scaled) <= 1e-4 * (1.0 + jnp.abs(scaled))
    assert bool(jnp.all(is_zero | is_scaled)), "dropout produced unexpected values"
    kept_frac = float(jnp.mean(jnp.logical_not(is_zero)))
    assert 0.05 < kept_frac < 0.95, f"implausible dropout keep fraction {kept_frac}"

    print("KERNEL_OK")
</pallas_src>

<mosaic_0001>
module attributes {stable_mosaic.version = 11 : i64} {
  func.func @_layernorm_kernel(%arg0: i32, %arg1: memref<16x32xf32, #tpu.memory_space<vmem>>, %arg2: memref<1x32xf32, #tpu.memory_space<vmem>>, %arg3: memref<1x32xf32, #tpu.memory_space<vmem>>, %arg4: memref<16x32xf32, #tpu.memory_space<vmem>>) attributes {dimension_semantics = [#tpu.dimension_semantics<parallel>], iteration_bounds = array<i64: 1>, scalar_prefetch = 0 : i64, scratch_operands = 0 : i64, tpu.core_type = #tpu.core_type<tc>, window_params = [{transform_indices = @transform_0, window_bounds = array<i64: 16, 32>}, {pipeline_mode = #tpu.pipeline_mode<synchronous>, transform_indices = @transform_1, window_bounds = array<i64: 1, 32>}, {pipeline_mode = #tpu.pipeline_mode<synchronous>, transform_indices = @transform_2, window_bounds = array<i64: 1, 32>}, {transform_indices = @transform_3, window_bounds = array<i64: 16, 32>}]} {
    %c0 = arith.constant 0 : index
    %c0_0 = arith.constant 0 : index
    %0 = vector.load %arg1[%c0, %c0_0] : memref<16x32xf32, #tpu.memory_space<vmem>>, vector<16x32xf32>
    %cst = arith.constant dense<0.000000e+00> : vector<16xf32>
    %1 = vector.multi_reduction <add>, %0, %cst [1] : vector<16x32xf32> to vector<16xf32>
    %2 = vector.shape_cast %1 : vector<16xf32> to vector<16x1xf32>
    %3 = arith.mulf %0, %0 : vector<16x32xf32>
    %cst_1 = arith.constant dense<0.000000e+00> : vector<16xf32>
    %4 = vector.multi_reduction <add>, %3, %cst_1 [1] : vector<16x32xf32> to vector<16xf32>
    %5 = vector.shape_cast %4 : vector<16xf32> to vector<16x1xf32>
    %cst_2 = arith.constant 3.125000e-02 : f32
    %6 = vector.broadcast %cst_2 : f32 to vector<16x1xf32>
    %7 = arith.mulf %2, %6 : vector<16x1xf32>
    %cst_3 = arith.constant 3.125000e-02 : f32
    %8 = vector.broadcast %cst_3 : f32 to vector<16x1xf32>
    %9 = arith.mulf %5, %8 : vector<16x1xf32>
    %10 = arith.mulf %7, %7 : vector<16x1xf32>
    %11 = arith.subf %9, %10 : vector<16x1xf32>
    %cst_4 = arith.constant 0.000000e+00 : f32
    %12 = vector.broadcast %cst_4 : f32 to vector<16x1xf32>
    %13 = arith.maximumf %11, %12 : vector<16x1xf32>
    %cst_5 = arith.constant 9.99999974E-6 : f32
    %14 = vector.broadcast %cst_5 : f32 to vector<16x1xf32>
    %15 = arith.addf %13, %14 : vector<16x1xf32>
    %16 = math.rsqrt %15 : vector<16x1xf32>
    %17 = vector.broadcast %7 : vector<16x1xf32> to vector<16x32xf32>
    %18 = arith.subf %0, %17 : vector<16x32xf32>
    %19 = vector.broadcast %16 : vector<16x1xf32> to vector<16x32xf32>
    %20 = arith.mulf %18, %19 : vector<16x32xf32>
    %c0_6 = arith.constant 0 : index
    %c0_7 = arith.constant 0 : index
    %21 = vector.load %arg2[%c0_6, %c0_7] : memref<1x32xf32, #tpu.memory_space<vmem>>, vector<1x32xf32>
    %22 = vector.broadcast %21 : vector<1x32xf32> to vector<16x32xf32>
    %23 = arith.mulf %20, %22 : vector<16x32xf32>
    %c0_8 = arith.constant 0 : index
    %c0_9 = arith.constant 0 : index
    %24 = vector.load %arg3[%c0_8, %c0_9] : memref<1x32xf32, #tpu.memory_space<vmem>>, vector<1x32xf32>
    %25 = vector.broadcast %24 : vector<1x32xf32> to vector<16x32xf32>
    %26 = arith.addf %23, %25 : vector<16x32xf32>
    %c0_10 = arith.constant 0 : index
    %c0_11 = arith.constant 0 : index
    %27 = vector.load %arg4[%c0_10, %c0_11] : memref<16x32xf32, #tpu.memory_space<vmem>>, vector<16x32xf32>
    tpu.vector_store %arg4[%c0_10, %c0_11], %26 {strides = array<i32>} : memref<16x32xf32, #tpu.memory_space<vmem>>, vector<16x32xf32>,
    return
  }
  func.func @transform_0(%arg0: i32) -> (i32, i32) {
    %c0_i32 = arith.constant 0 : i32
    %c0_i32_0 = arith.constant 0 : i32
    return %arg0, %c0_i32 : i32, i32
  }
  func.func @transform_1(%arg0: i32) -> (i32, i32) {
    %c0_i32 = arith.constant 0 : i32
    %c0_i32_0 = arith.constant 0 : i32
    %c0_i32_1 = arith.constant 0 : i32
    return %c0_i32, %c0_i32_0 : i32, i32
  }
  func.func @transform_2(%arg0: i32) -> (i32, i32) {
    %c0_i32 = arith.constant 0 : i32
    %c0_i32_0 = arith.constant 0 : i32
    %c0_i32_1 = arith.constant 0 : i32
    return %c0_i32, %c0_i32_0 : i32, i32
  }
  func.func @transform_3(%arg0: i32) -> (i32, i32) {
    %c0_i32 = arith.constant 0 : i32
    %c0_i32_0 = arith.constant 0 : i32
    return %arg0, %c0_i32 : i32, i32
  }
}

</mosaic_0001>

<bundles_post_ra>
// kernel: tpu_custom_call.1
= control target key start
LH: loop header
LB: loop body
LE: loop exit
PB: predicated region body
PF: predicated region fallthrough
CT: control target
= control target key end

     0   :  { %8 = vsyncpa [#allocation3], 0  ;;  %s270_s0 = inlined_call_operand.hbm [shape: f32[16,32], index: 0, kind: input, shape index: {}]   ;;  %s271_s1 = inlined_call_operand.hbm [shape: f32[1,32], index: 1, kind: input, shape index: {}]   ;;  %s272_s2 = inlined_call_operand.vmem [shape: f32[1,32], index: 2, kind: input, shape index: {}]   ;;  %s273_s3 = inlined_call_operand.hbm [shape: f32[16,32], index: 3, kind: output, shape index: {}]  }
   0x1   :  { %9 = vsyncpa [#allocation6], 0 }
   0x2   :  { %10 = vsyncpa [#allocation4], 0  ;;  %s15_s14 = sshll.u32 %s270_s0, 4  ;;  %s221_s15 = smov [#allocation2]   ;;  %s16_s14 = int_to_ptr.hbm [resolvable:$true] %s15_s14 }
   0x3   :  { %s17_s16 = sshll.u32 %s221_s15, 4  ;;  %s29_s19 = sshll.u32 %s271_s1, 4  ;;  %s18_s16 = int_to_ptr.vmem [resolvable:$true] %s17_s16  ;;  %s30_s19 = int_to_ptr.hbm [resolvable:$true] %s29_s19 }
   0x4   :  { %s222_s20 = smov 128   ;;  %s223_s21 = smov 8  }
   0x5   :  { %23 = dma.hbm_to_vmem [thread:$0]  %s16_s14, 256, %s18_s16, [#allocation3], %s222_s20, %s222_s20, %s223_s21  }
   0x6   :  { %s224_s22 = smov [#allocation5]  }
   0x7   :  { %s31_s23 = sshll.u32 %s224_s22, 4  ;;  %s32_s23 = int_to_ptr.vmem [resolvable:$true] %s31_s23 }
   0x8   :  { %34 = dma.hbm_to_vmem [thread:$0]  %s30_s19, 16, %s32_s23, [#allocation6]  }
   0x9   :  { %215 = dma.done.wait [#allocation3], 256  }
   0xa   :  { %216 = vsyncadd [#allocation3], 4294967040 }
   0xb   :  { %217 = dma.done.wait [#allocation6], 16  }
   0xc   :  { %218 = vsyncadd [#allocation6], 4294967280  ;;  %vm47_vm0 = vcmask 261120   ;;  %v45_v0 = vld [vmem:[#allocation2] sm:$0xff]  ;;  %v46_v3 = vld [vmem:[#allocation2 + $0x8] sm:$0xff]  ;;  %s225_s24 = smov [#allocation7]  }
   0xd   :  { %v48_v1 = vsel %vm47_vm0, %v45_v0, 0.0  ;;  %v54_v2 = vmul.f32 %v45_v0, %v45_v0  ;;  %v55_v5 = vmul.f32 %v46_v3, %v46_v3  ;;  %v51_v6 = vsel %vm47_vm0, %v46_v3, 0.0  ;;  %v137_v33 = vld [vmem:[#allocation5] ss:$0 sm:$0xff]  ;;  %v138_v37 = vld [vmem:[%s272_s2] ss:$0 sm:$0xff] }
   0xe   :  { %49 = vadd.xlane.f32.xlu0 %v48_v1  ;;  %s116_s25 = sshll.u32 %s225_s24, 4  ;;  %s118_s28 = sshll.u32 %s273_s3, 4  ;;  %s117_s25 = int_to_ptr.vmem [resolvable:$true] %s116_s25  ;;  %s119_s28 = int_to_ptr.hbm [resolvable:$true] %s118_s28 }
   0xf   :  { %v56_v4 = vsel %vm47_vm0, %v54_v2, 0.0  ;;  %v59_v7 = vsel %vm47_vm0, %v55_v5, 0.0 }
  0x10   :  { %57 = vadd.xlane.f32.xlu1 %v56_v4 }
  0x16   :  { %52 = vadd.xlane.f32.xlu0 %v51_v6 }
  0x18   :  { %60 = vadd.xlane.f32.xlu1 %v59_v7 }
  0x81   :  { %v50_v8 = vpop.xlane.xlu0 %49 }
  0x82   :  { %v62_v9 = vmul.f32 0.03125, %v50_v8 }
  0x83   :  { %v58_v10 = vpop.xlane.xlu1 %57 }
  0x84   :  { %v66_v11 = vmul.f32 %v62_v9, %v62_v9  ;;  %v64_v12 = vmul.f32 0.03125, %v58_v10  ;;  %v94_v31 = vsub.f32 %v45_v0, %v62_v9 }
  0x86   :  { %v68_v13 = vsub.f32 %v64_v12, %v66_v11 }
  0x88   :  { %v70_v14 = vmax.f32 %v68_v13, 0.0 }
  0x89   :  { %v53_v15 = vpop.xlane.xlu0 %52 }
  0x8a   :  { %v72_v16 = vadd.f32 1e-05, %v70_v14  ;;  %v63_v17 = vmul.f32 0.03125, %v53_v15 }
  0x8b   :  { %v61_v18 = vpop.xlane.xlu1 %60 }
  0x8c   :  { %139 = vrsqrt.f32 %v72_v16  ;;  %v67_v19 = vmul.f32 %v63_v17, %v63_v17  ;;  %v65_v20 = vmul.f32 0.03125, %v61_v18  ;;  %vm80_vm2 = vweird.f32 %v72_v16 }
  0x8d   :  { %v95_v43 = vsub.f32 %v46_v3, %v63_v17 }
  0x8e   :  { %v69_v21 = vsub.f32 %v65_v20, %v67_v19 }
  0x90   :  { %v71_v22 = vmax.f32 %v69_v21, 0.0 }
  0x92   :  { %v140_v23 = vpop.eup %139  ;;  %v73_v25 = vadd.f32 1e-05, %v71_v22 }
  0x93   :  { %v75_v24 = vmul.f32 %v140_v23, %v72_v16  ;;  %vm81_vm1 = vweird.f32 %v140_v23 }
  0x94   :  { %141 = vrsqrt.f32 %v73_v25  ;;  %vm82_vm3 = vmor %vm80_vm2, %vm81_vm1  ;;  %vm90_vm5 = vweird.f32 %v73_v25 }
  0x95   :  { %v76_v26 = vmul.f32 %v140_v23, %v75_v24 }
  0x97   :  { %v77_v27 = vmul.f32 0.5, %v76_v26 }
  0x99   :  { %v78_v28 = vsub.f32 1.5, %v77_v27 }
  0x9a   :  { %v142_v29 = vpop.eup %141 }
  0x9b   :  { %v79_v30 = vmul.f32 %v140_v23, %v78_v28  ;;  %v85_v32 = vmul.f32 %v142_v29, %v73_v25  ;;  %vm91_vm4 = vweird.f32 %v142_v29 }
  0x9c   :  { %vm92_vm6 = vmor %vm90_vm5, %vm91_vm4 }
  0x9d   :  { %v83_v34 = vsel %vm82_vm3, %v140_v23, %v79_v30  ;;  %v86_v36 = vmul.f32 %v142_v29, %v85_v32 }
  0x9e   :  { %v96_v35 = vmul.f32 %v94_v31, %v83_v34 }
  0x9f   :  { %v87_v38 = vmul.f32 0.5, %v86_v36 }
  0xa0   :  { %v102_v39 = vmul.f32 %v137_v33, %v96_v35 }
  0xa1   :  { %v88_v40 = vsub.f32 1.5, %v87_v38 }
  0xa2   :  { %v108_v41 = vadd.f32 %v138_v37, %v102_v39 }
  0xa3   :  { %v89_v42 = vmul.f32 %v142_v29, %v88_v40 }
  0xa4   :  { %110 = vst.msk [vmem:[#allocation7] sm:$0xff] %vm47_vm0, %v108_v41 }
  0xa5   :  { %v93_v44 = vsel %vm92_vm6, %v142_v29, %v89_v42 }
  0xa6   :  { %v97_v45 = vmul.f32 %v95_v43, %v93_v44 }
  0xa8   :  { %v103_v46 = vmul.f32 %v137_v33, %v97_v45 }
  0xaa   :  { %v109_v47 = vadd.f32 %v138_v37, %v103_v46 }
  0xac   :  { %111 = vst.msk [vmem:[#allocation7 + $0x8] sm:$0xff] %vm47_vm0, %v109_v47 }
  0xad   :  { %124 = dma.vmem_to_hbm [thread:$0]  %s117_s25, 256, %s119_s28, [#allocation4], %s222_s20, %s222_s20, %s223_s21  }
  0xae   :  { %219 = dma.done.wait [#allocation4], 256  }
  0xaf   :  { %220 = vsyncadd [#allocation4], 4294967040 }
  0xb0   :  { %129 = vsyncpa [#allocation3], 1 }
  0xb1   :  { %130 = vsyncpa [#allocation6], 1 }
  0xb2   :  { %131 = vsyncpa [#allocation4], 1 }

</bundles_post_ra>
